<compile_context>
chip_gen: v6e
topology: v6e:2x2x1
jax: 0.10.0
libtpu: 0.0.40
codegen_flags: <defaults>
</compile_context>

<pallas_src>
import jax
import jax.numpy as jnp
from jax.experimental import pallas as pl
from jax.experimental.pallas import tpu as pltpu


def _round_up(x, m):
    return ((x + m - 1) // m) * m


def defender_kernel(x_ref, w1_ref, b1_ref, w2_ref, b2_ref, w3_ref, b3_ref, o_ref):
    """Fused 3-layer MLP on one (TB, D) batch tile, computed batch-along-lanes."""
    # bf16 operands for the MXU; all elementwise math stays f32.
    xb = x_ref[...].astype(jnp.bfloat16)                                    # (TB, D)

    # Layer 1: h1^T = W1 @ x^T via contraction of the two minor (D) axes -- the same
    # "nt" MXU pattern as q @ k^T in attention.  Result (128, TB) f32.
    h1 = jax.lax.dot_general(
        w1_ref[...], xb, (((1,), (1,)), ((), ())),
        preferred_element_type=jnp.float32)
    h1 = jnp.maximum(h1 + b1_ref[...], 0.0)                                 # bias col bcast over lanes (VPU)

    # Layer 2: h2^T = W2 @ h1^T (standard MXU matmul).  Result (64, TB) f32.
    h2 = jnp.dot(w2_ref[...], h1.astype(jnp.bfloat16),
                 preferred_element_type=jnp.float32)
    h2 = jnp.maximum(h2 + b2_ref[...], 0.0)

    # Layer 3 (out_features == 1): weighted sublane reduce instead of an M=1 matmul.
    z = jnp.sum(h2 * w3_ref[...], axis=0, keepdims=True)                    # (1, TB)
    z = z + b3_ref[0]                                                       # scalar bias from SMEM

    # Sigmoid epilogue on a lane-dense (1, TB) row: exp + approx reciprocal on the EUP.
    o_ref[0] = pl.reciprocal(1.0 + jnp.exp(-z), approx=True)


def _pick_batch_tile(B, D, block_b):
    """Largest multiple-of-8 batch tile that fits a conservative VMEM budget."""
    # Per-row VMEM bytes: x double-buffer (2*D*4) + h1 f32+bf16 (128*6)
    # + h2 f32 (64*4) + lane-dense output double-buffer (~8).
    per_row = 8 * D + 128 * 6 + 64 * 4 + 8
    vmem_budget = 12 * 1024 * 1024        # stays under the smallest (v5e 16 MiB) scoped default
    cap = max(8, (vmem_budget // per_row) // 8 * 8)
    tb = min(block_b, _round_up(B, 8), cap)
    # v7x megacore: once the batch is big, keep >= 2 grid steps so both TCs get work.
    if B >= 2048:
        tb = min(tb, _round_up(pl.cdiv(B, 2), 8))
    return max(8, (tb // 8) * 8)


def defender_forward(x, params, *, block_b=4096):
    """Defender forward pass: x (B, input_dim) -> (B, 1) f32 in [0, 1].

    `params` are in PyTorch layout: W (out_features, in_features), b (out_features,).
    Passing x as bf16 additionally halves the dominant HBM read traffic.
    """
    w1, b1, w2, b2, w3, b3 = params
    B, D = x.shape

    # Kernel-layout params (tiny, one-time ops): MXU operands bf16, biases as f32
    # columns that broadcast over the lane (batch) axis, layer-3 weights as a column.
    w1k = w1.astype(jnp.bfloat16)                       # (128, D)
    b1k = b1.reshape(128, 1).astype(jnp.float32)
    w2k = w2.astype(jnp.bfloat16)                       # (64, 128)
    b2k = b2.reshape(64, 1).astype(jnp.float32)
    w3k = w3.reshape(64, 1).astype(jnp.float32)
    b3k = b3.reshape(1).astype(jnp.float32)             # single scalar -> SMEM

    TB = _pick_batch_tile(B, D, block_b)
    num_tiles = pl.cdiv(B, TB)                          # ragged last block; no jnp.pad

    # Constant index map => block never changes => weights DMA'd once, stay resident.
    def resident(arr):
        zeros = (0,) * arr.ndim
        return pl.BlockSpec(arr.shape, lambda i, _z=zeros: _z)

    out = pl.pallas_call(
        defender_kernel,
        out_shape=jax.ShapeDtypeStruct((num_tiles, 1, TB), jnp.float32),
        grid=(num_tiles,),
        in_specs=[
            pl.BlockSpec((TB, D), lambda i: (i, 0)),    # x tile (double-buffered DMA)
            resident(w1k), resident(b1k),
            resident(w2k), resident(b2k),
            resident(w3k),
            pl.BlockSpec(memory_space=pltpu.MemorySpace.SMEM),  # b3 scalar
        ],
        out_specs=pl.BlockSpec((1, 1, TB), lambda i: (i, 0, 0)),
        compiler_params=pltpu.CompilerParams(
            dimension_semantics=("parallel",),          # megacore sharding on v7x
        ),
    )(x, w1k, b1k, w2k, b2k, w3k, b3k)

    # Lane-dense (num_tiles, 1, TB) -> (B, 1); tile i, lane t is global row i*TB + t.
    return out.reshape(num_tiles * TB, 1)[:B]


def init_params(key, input_dim):
    """PyTorch nn.Linear default init: W (out, in), b (out,), U[-1/sqrt(in), 1/sqrt(in)]."""
    def uniform(k, shape, fan_in):
        bound = 1.0 / jnp.sqrt(jnp.float32(fan_in))
        return jax.random.uniform(k, shape, jnp.float32, -bound, bound)

    k1w, k1b, k2w, k2b, k3w, k3b = jax.random.split(key, 6)
    w1 = uniform(k1w, (128, input_dim), input_dim)
    b1 = uniform(k1b, (128,), input_dim)
    w2 = uniform(k2w, (64, 128), 128)
    b2 = uniform(k2b, (64,), 128)
    w3 = uniform(k3w, (1, 64), 64)
    b3 = uniform(k3b, (1,), 64)
    return (w1, b1, w2, b2, w3, b3)


def defender_reference(x, params):
    w1, b1, w2, b2, w3, b3 = params
    h1 = jnp.maximum(x @ w1.T + b1, 0.0)
    h2 = jnp.maximum(h1 @ w2.T + b2, 0.0)
    return jax.nn.sigmoid(h2 @ w3.T + b3)


if __name__ == "__main__":
    key = jax.random.PRNGKey(0)
    k_params, k_x1, k_x2 = jax.random.split(key, 3)

    input_dim = 32
    params = init_params(k_params, input_dim)

    # Small single-tile case: B=16 -> one (16, 32) tile, grid=(1,).
    x_small = jax.random.normal(k_x1, (16, input_dim), jnp.float32)
    out_small = jax.block_until_ready(defender_forward(x_small, params))
    ref_small = defender_reference(x_small, params)
    assert out_small.shape == (16, 1), out_small.shape
    # bf16 MXU operands + approx-reciprocal sigmoid: ~1e-3 abs error budget on a [0,1] output.
    assert jnp.allclose(out_small, ref_small, atol=1e-2, rtol=1e-2), (
        "small-batch mismatch", float(jnp.max(jnp.abs(out_small - ref_small))))

    # Multi-tile case with a ragged last block (no jnp.pad): B=600, TB=256 -> grid=(3,).
    x_big = jax.random.normal(k_x2, (600, input_dim), jnp.float32)
    out_big = jax.block_until_ready(defender_forward(x_big, params, block_b=256))
    ref_big = defender_reference(x_big, params)
    assert out_big.shape == (600, 1), out_big.shape
    assert jnp.allclose(out_big, ref_big, atol=1e-2, rtol=1e-2), (
        "tiled-batch mismatch", float(jnp.max(jnp.abs(out_big - ref_big))))

    print("KERNEL_OK")
</pallas_src>

<mosaic_0001>
module attributes {stable_mosaic.version = 11 : i64} {
  func.func @defender_kernel(%arg0: i32, %arg1: memref<16x32xf32, #tpu.memory_space<vmem>>, %arg2: memref<128x32xbf16, #tpu.memory_space<vmem>>, %arg3: memref<128x1xf32, #tpu.memory_space<vmem>>, %arg4: memref<64x128xbf16, #tpu.memory_space<vmem>>, %arg5: memref<64x1xf32, #tpu.memory_space<vmem>>, %arg6: memref<64x1xf32, #tpu.memory_space<vmem>>, %arg7: memref<1xf32, #tpu.memory_space<smem>>, %arg8: memref<1x1x16xf32, #tpu.memory_space<vmem>>) attributes {dimension_semantics = [#tpu.dimension_semantics<parallel>], iteration_bounds = array<i64: 1>, scalar_prefetch = 0 : i64, scratch_operands = 0 : i64, tpu.core_type = #tpu.core_type<tc>, window_params = [{transform_indices = @transform_0, window_bounds = array<i64: 16, 32>}, {pipeline_mode = #tpu.pipeline_mode<synchronous>, transform_indices = @transform_1, window_bounds = array<i64: 128, 32>}, {pipeline_mode = #tpu.pipeline_mode<synchronous>, transform_indices = @transform_2, window_bounds = array<i64: 128, 1>}, {pipeline_mode = #tpu.pipeline_mode<synchronous>, transform_indices = @transform_3, window_bounds = array<i64: 64, 128>}, {pipeline_mode = #tpu.pipeline_mode<synchronous>, transform_indices = @transform_4, window_bounds = array<i64: 64, 1>}, {pipeline_mode = #tpu.pipeline_mode<synchronous>, transform_indices = @transform_5, window_bounds = array<i64: 64, 1>}, {transform_indices = @transform_6, window_bounds = array<i64: 1>}, {transform_indices = @transform_7, window_bounds = array<i64: 1, 1, 16>}]} {
    %c0 = arith.constant 0 : index
    %c0_0 = arith.constant 0 : index
    %0 = vector.load %arg1[%c0, %c0_0] : memref<16x32xf32, #tpu.memory_space<vmem>>, vector<16x32xf32>
    %1 = arith.truncf %0 : vector<16x32xf32> to vector<16x32xbf16>
    %c0_1 = arith.constant 0 : index
    %c0_2 = arith.constant 0 : index
    %2 = vector.load %arg2[%c0_1, %c0_2] : memref<128x32xbf16, #tpu.memory_space<vmem>>, vector<128x32xbf16>
    %cst = arith.constant dense<0.000000e+00> : vector<128x16xf32>
    %3 = tpu.matmul %2, %1, %cst {dimension_numbers = #tpu.dot_dimension_numbers<[1], [1], [0], [0], [0, 0, 1, 0], [], []>} : vector<128x32xbf16>, vector<16x32xbf16>, vector<128x16xf32> -> vector<128x16xf32>
    %c0_3 = arith.constant 0 : index
    %c0_4 = arith.constant 0 : index
    %4 = vector.load %arg3[%c0_3, %c0_4] : memref<128x1xf32, #tpu.memory_space<vmem>>, vector<128x1xf32>
    %5 = vector.broadcast %4 : vector<128x1xf32> to vector<128x16xf32>
    %6 = arith.addf %3, %5 : vector<128x16xf32>
    %cst_5 = arith.constant 0.000000e+00 : f32
    %7 = vector.broadcast %cst_5 : f32 to vector<128x16xf32>
    %8 = arith.maximumf %6, %7 : vector<128x16xf32>
    %c0_6 = arith.constant 0 : index
    %c0_7 = arith.constant 0 : index
    %9 = vector.load %arg4[%c0_6, %c0_7] : memref<64x128xbf16, #tpu.memory_space<vmem>>, vector<64x128xbf16>
    %10 = arith.truncf %8 : vector<128x16xf32> to vector<128x16xbf16>
    %cst_8 = arith.constant dense<0.000000e+00> : vector<64x16xf32>
    %11 = tpu.matmul %9, %10, %cst_8 {dimension_numbers = #tpu.dot_dimension_numbers<[1], [0], [0], [1], [0, 0, 1, 1], [], []>} : vector<64x128xbf16>, vector<128x16xbf16>, vector<64x16xf32> -> vector<64x16xf32>
    %c0_9 = arith.constant 0 : index
    %c0_10 = arith.constant 0 : index
    %12 = vector.load %arg5[%c0_9, %c0_10] : memref<64x1xf32, #tpu.memory_space<vmem>>, vector<64x1xf32>
    %13 = vector.broadcast %12 : vector<64x1xf32> to vector<64x16xf32>
    %14 = arith.addf %11, %13 : vector<64x16xf32>
    %cst_11 = arith.constant 0.000000e+00 : f32
    %15 = vector.broadcast %cst_11 : f32 to vector<64x16xf32>
    %16 = arith.maximumf %14, %15 : vector<64x16xf32>
    %c0_12 = arith.constant 0 : index
    %c0_13 = arith.constant 0 : index
    %17 = vector.load %arg6[%c0_12, %c0_13] : memref<64x1xf32, #tpu.memory_space<vmem>>, vector<64x1xf32>
    %18 = vector.broadcast %17 : vector<64x1xf32> to vector<64x16xf32>
    %19 = arith.mulf %16, %18 : vector<64x16xf32>
    %cst_14 = arith.constant dense<0.000000e+00> : vector<16xf32>
    %20 = vector.multi_reduction <add>, %19, %cst_14 [0] : vector<64x16xf32> to vector<16xf32>
    %21 = vector.shape_cast %20 : vector<16xf32> to vector<1x16xf32>
    %c0_15 = arith.constant 0 : index
    %22 = memref.load %arg7[%c0_15] : memref<1xf32, #tpu.memory_space<smem>>
    %23 = vector.broadcast %22 : f32 to vector<1x16xf32>
    %24 = arith.addf %21, %23 : vector<1x16xf32>
    %cst_16 = arith.constant 0.000000e+00 : f32
    %25 = vector.broadcast %cst_16 : f32 to vector<1x16xf32>
    %26 = arith.subf %25, %24 : vector<1x16xf32>
    %27 = math.exp %26 : vector<1x16xf32>
    %cst_17 = arith.constant 1.000000e+00 : f32
    %28 = vector.broadcast %cst_17 : f32 to vector<1x16xf32>
    %29 = arith.addf %28, %27 : vector<1x16xf32>
    %30 = tpu.reciprocal %29 {approx = true} : vector<1x16xf32> -> vector<1x16xf32>
    %c0_18 = arith.constant 0 : index
    %c0_19 = arith.constant 0 : index
    %c0_20 = arith.constant 0 : index
    %31 = vector.load %arg8[%c0_18, %c0_19, %c0_20] : memref<1x1x16xf32, #tpu.memory_space<vmem>>, vector<1x1x16xf32>
    %32 = vector.shape_cast %31 : vector<1x1x16xf32> to vector<1x16xf32>
    %33 = vector.shape_cast %30 : vector<1x16xf32> to vector<1x1x16xf32>
    tpu.vector_store %arg8[%c0_18, %c0_19, %c0_20], %33 {strides = array<i32>} : memref<1x1x16xf32, #tpu.memory_space<vmem>>, vector<1x1x16xf32>,
    return
  }
  func.func @transform_0(%arg0: i32) -> (i32, i32) {
    %c0_i32 = arith.constant 0 : i32
    %c0_i32_0 = arith.constant 0 : i32
    return %arg0, %c0_i32 : i32, i32
  }
  func.func @transform_1(%arg0: i32) -> (i32, i32) {
    %c0_i32 = arith.constant 0 : i32
    %c0_i32_0 = arith.constant 0 : i32
    %c0_i32_1 = arith.constant 0 : i32
    return %c0_i32, %c0_i32_0 : i32, i32
  }
  func.func @transform_2(%arg0: i32) -> (i32, i32) {
    %c0_i32 = arith.constant 0 : i32
    %c0_i32_0 = arith.constant 0 : i32
    %c0_i32_1 = arith.constant 0 : i32
    return %c0_i32, %c0_i32_0 : i32, i32
  }
  func.func @transform_3(%arg0: i32) -> (i32, i32) {
    %c0_i32 = arith.constant 0 : i32
    %c0_i32_0 = arith.constant 0 : i32
    %c0_i32_1 = arith.constant 0 : i32
    return %c0_i32, %c0_i32_0 : i32, i32
  }
  func.func @transform_4(%arg0: i32) -> (i32, i32) {
    %c0_i32 = arith.constant 0 : i32
    %c0_i32_0 = arith.constant 0 : i32
    %c0_i32_1 = arith.constant 0 : i32
    return %c0_i32, %c0_i32_0 : i32, i32
  }
  func.func @transform_5(%arg0: i32) -> (i32, i32) {
    %c0_i32 = arith.constant 0 : i32
    %c0_i32_0 = arith.constant 0 : i32
    %c0_i32_1 = arith.constant 0 : i32
    return %c0_i32, %c0_i32_0 : i32, i32
  }
  func.func @transform_6(%arg0: i32) -> i32 {
    %c0_i32 = arith.constant 0 : i32
    %c0_i32_0 = arith.constant 0 : i32
    return %c0_i32 : i32
  }
  func.func @transform_7(%arg0: i32) -> (i32, i32, i32) {
    %c0_i32 = arith.constant 0 : i32
    %c0_i32_0 = arith.constant 0 : i32
    %c0_i32_1 = arith.constant 0 : i32
    return %arg0, %c0_i32, %c0_i32_0 : i32, i32, i32
  }
}

</mosaic_0001>

<bundles_post_ra>
// kernel: tpu_custom_call.1
= control target key start
LH: loop header
LB: loop body
LE: loop exit
PB: predicated region body
PF: predicated region fallthrough
CT: control target
= control target key end

     0   :  { %vm184_vm0 = vcmask 261120   ;;  %v714_v4 = vmov 0   ;;  %s927_s0 = inlined_call_operand.vmem [shape: f32[16,32], index: 0, kind: input, shape index: {}]   ;;  %s928_s1 = inlined_call_operand.vmem [shape: bf16[128,32], index: 1, kind: input, shape index: {}]   ;;  %s929_s2 = inlined_call_operand.vmem [shape: f32[128,1], index: 2, kind: input, shape index: {}]   ;;  %s930_s3 = inlined_call_operand.vmem [shape: bf16[64,128], index: 3, kind: input, shape index: {}]   ;;  %s931_s4 = inlined_call_operand.vmem [shape: f32[64,1], index: 4, kind: input, shape index: {}]   ;;  %s932_s5 = inlined_call_operand.vmem [shape: f32[64,1], index: 5, kind: input, shape index: {}]   ;;  %s933_s6 = inlined_call_operand.<no memory space> [shape: f32[1], index: 6, kind: input, shape index: {}]   ;;  %s934_s7 = inlined_call_operand.hbm [shape: f32[1,1,16], index: 7, kind: output, shape index: {}]  }
   0x1   :  { %v29_v0 = vld [vmem:[%s927_s0] sm:$0xff]  ;;  %v30_v1 = vld [vmem:[%s927_s0 + $0x8] sm:$0xff]  ;;  %674 = vset.pattern.permute.xlu0 %v714_v4  ;;  %675 = vset.pattern.permute.xlu1 %v714_v4  ;;  %v678_v7 = vld [vmem:[%s928_s1 + $0x10] sm:$0xff]  }
   0x2   :  { %v31_v2 = vpack.c.bf16 %v30_v1, %v29_v0  ;;  %v676_v3 = vld [vmem:[%s928_s1] sm:$0xff]   ;;  %v677_v6 = vld [vmem:[%s928_s1 + $0x8] sm:$0xff]   ;;  %v62_v8 = vld [vmem:[%s929_s2 + $0x70] sm:$0xff] }
   0x3   :  { %631 = vmatprep.mubr.msk.bf16.mxu0 %vm184_vm0, %v676_v3  ;;  %136 = vperm.xlu0 %674, %v62_v8   ;;  %v60_v9 = vld [vmem:[%s929_s2 + $0x60] sm:$0xff]  ;;  %v63_v10 = vld [vmem:[%s929_s2 + $0x78] sm:$0xff]  ;;  %v61_v11 = vld [vmem:[%s929_s2 + $0x68] sm:$0xff] }
   0x4   :  { %671 = vmatprep.subr.msk.bf16.mxu0 %vm184_vm0, %v31_v2  ;;  %v210_v5 = vsel %vm184_vm0, %v31_v2, 0  ;;  %126 = vperm.xlu1 %675, %v60_v9   ;;  %v58_v12 = vld [vmem:[%s929_s2 + $0x50] sm:$0xff]  ;;  %v679_v13 = vld [vmem:[%s928_s1 + $0x18] sm:$0xff]   ;;  %v680_v15 = vld [vmem:[%s928_s1 + $0x20] sm:$0xff]  }
   0x5   :  { %630 = vmatpush3.bf16.xpose.msra.mxu0 %v210_v5  ;;  %v59_v14 = vld [vmem:[%s929_s2 + $0x58] sm:$0xff]  ;;  %v56_v16 = vld [vmem:[%s929_s2 + $0x40] sm:$0xff]  ;;  %v57_v17 = vld [vmem:[%s929_s2 + $0x48] sm:$0xff] }
   0x6   :  { %v54_v18 = vld [vmem:[%s929_s2 + $0x30] sm:$0xff] }
   0x7   :  { %141 = vperm.xlu0 %674, %v63_v10  }
   0x8   :  { %131 = vperm.xlu1 %675, %v61_v11  }
   0xb   :  { %116 = vperm.xlu0 %674, %v58_v12  }
   0xc   :  { %632 = vmatmul.mubr.msk.bf16.vlgmr.msra.gmra.mxu0 %vm184_vm0, %v677_v6  ;;  %121 = vperm.xlu1 %675, %v59_v14  }
   0xd   :  { %635 = vmatprep.mubr.msk.bf16.mxu0 %vm184_vm0, %v678_v7 }
   0xf   :  { %106 = vperm.xlu0 %674, %v56_v16  }
  0x10   :  { %111 = vperm.xlu1 %675, %v57_v17  }
  0x14   :  { %636 = vmatmul.mubr.msk.bf16.gmra.mxu0 %vm184_vm0, %v679_v13 }
  0x15   :  { %639 = vmatprep.mubr.msk.bf16.mxu0 %vm184_vm0, %v680_v15 }
  0x16   :  { %13 = vsyncpa [#allocation4], 0  ;;  %v681_v19 = vld [vmem:[%s928_s1 + $0x28] sm:$0xff]   ;;  %v55_v20 = vld [vmem:[%s929_s2 + $0x38] sm:$0xff]  ;;  %96 = vperm.xlu0 %674, %v54_v18   ;;  %vm542_vm1 = vcmask 130048   ;;  %s715_s15 = smov [#allocation3]  }
  0x17   :  { %v682_v21 = vld [vmem:[%s928_s1 + $0x30] sm:$0xff]   ;;  %101 = vperm.xlu1 %675, %v55_v20   ;;  %v52_v22 = vld [vmem:[%s929_s2 + $0x20] sm:$0xff]  ;;  %v53_v23 = vld [vmem:[%s929_s2 + $0x28] sm:$0xff]  ;;  %s580_s16 = sshll.u32 %s715_s15, 4  ;;  %vm572_vm2 = vcmask 122880   ;;  %s581_s16 = int_to_ptr.vmem [resolvable:$true] %s580_s16 }
  0x18   :  { %v50_v24 = vld [vmem:[%s929_s2 + $0x10] sm:$0xff]  ;;  %v683_v25 = vld [vmem:[%s928_s1 + $0x38] sm:$0xff]   ;;  %v48_v27 = vld [vmem:[%s929_s2] sm:$0xff]  ;;  %s692_s17 = scalar_lea.vmem %s581_s16, 16  ;;  %s696_s18 = scalar_lea.vmem %s581_s16, 32 }
  0x19   :  { %v51_v26 = vld [vmem:[%s929_s2 + $0x18] sm:$0xff]  ;;  %v49_v28 = vld [vmem:[%s929_s2 + $0x8] sm:$0xff]  ;;  %v341_v29 = vld [vmem:[%s931_s4] sm:$0xff]  ;;  %p693_p0 = scmp.ne.s32.totalorder %s581_s16, %s692_s17  ;;  %p697_p1 = scmp.lt.s32.totalorder %s581_s16, %s581_s16 }
  0x1a   :  { %86 = vperm.xlu0 %674, %v52_v22   ;;  %v342_v30 = vld [vmem:[%s931_s4 + $0x8] sm:$0xff]  ;;  %v343_v31 = vld [vmem:[%s931_s4 + $0x10] sm:$0xff]  ;;  %v344_v32 = vld [vmem:[%s931_s4 + $0x18] sm:$0xff]  ;;  %p698_p2 = scmp.lt.s32.totalorder %s696_s18, %s692_s17 }
  0x1b   :  { %91 = vperm.xlu1 %675, %v53_v23   ;;  %v486_v33 = vld [vmem:[%s932_s5] sm:$0xff]  ;;  %v487_v34 = vld [vmem:[%s932_s5 + $0x8] sm:$0xff]  ;;  %v488_v36 = vld [vmem:[%s932_s5 + $0x10] sm:$0xff] }
  0x1c   :  { %640 = vmatmul.mubr.msk.bf16.gmra.mxu0 %vm184_vm0, %v681_v19  ;;  %v345_v35 = vld [vmem:[%s931_s4 + $0x20] sm:$0xff]  ;;  %v346_v37 = vld [vmem:[%s931_s4 + $0x28] sm:$0xff]  ;;  %v489_v38 = vld [vmem:[%s932_s5 + $0x18] sm:$0xff]  ;;  %p699_p3 = por %p698_p2, %p697_p1 }
  0x1d   :  { %643 = vmatprep.mubr.msk.bf16.mxu0 %vm184_vm0, %v682_v21  ;;  %v347_v39 = vld [vmem:[%s931_s4 + $0x30] sm:$0xff]  ;;  %v490_v40 = vld [vmem:[%s932_s5 + $0x20] sm:$0xff]  ;;  %v348_v41 = vld [vmem:[%s931_s4 + $0x38] sm:$0xff] }
  0x1e   :  { %76 = vperm.xlu0 %674, %v50_v24   ;;  %v491_v42 = vld [vmem:[%s932_s5 + $0x28] sm:$0xff]  ;;  %v492_v43 = vld [vmem:[%s932_s5 + $0x30] sm:$0xff]  ;;  %v493_v44 = vld [vmem:[%s932_s5 + $0x38] sm:$0xff]  ;;  %p700_p4 = pnand %p699_p3, %p693_p0 }
  0x1f   :  { %81 = vperm.xlu1 %675, %v51_v26   ;;  %v684_v45 = vld [vmem:[%s930_s3] sm:$0xff]  }
  0x20   :  { %663 = vmatprep.mubr.bf16.mxu1 %v684_v45 }
  0x22   :  { %66 = vperm.xlu0 %674, %v48_v27  }
  0x23   :  { %71 = vperm.xlu1 %675, %v49_v28  }
  0x24   :  { %644 = vmatmul.mubr.msk.bf16.gmra.mxu0 %vm184_vm0, %v683_v25 }
  0x26   :  { %351 = vperm.xlu0 %674, %v341_v29  }
  0x27   :  { %356 = vperm.xlu1 %675, %v342_v30  }
  0x2a   :  { %361 = vperm.xlu0 %674, %v343_v31  }
  0x2b   :  { %366 = vperm.xlu1 %675, %v344_v32  }
  0x2e   :  { %496 = vperm.xlu0 %674, %v486_v33  }
  0x2f   :  { %501 = vperm.xlu1 %675, %v487_v34  }
  0x32   :  { %371 = vperm.xlu0 %674, %v345_v35  }
  0x33   :  { %506 = vperm.xlu1 %675, %v488_v36  }
  0x36   :  { %376 = vperm.xlu0 %674, %v346_v37  }
  0x37   :  { %511 = vperm.xlu1 %675, %v489_v38  }
  0x3a   :  { %381 = vperm.xlu0 %674, %v347_v39  }
  0x3b   :  { %516 = vperm.xlu1 %675, %v490_v40  }
  0x3e   :  { %386 = vperm.xlu0 %674, %v348_v41  }
  0x3f   :  { %521 = vperm.xlu1 %675, %v491_v42  }
  0x42   :  { %526 = vperm.xlu0 %674, %v492_v43  }
  0x43   :  { %531 = vperm.xlu1 %675, %v493_v44  }
  0x7e   :  { %v137_v52 = vpop.permute.xlu0 %136 }
  0x7f   :  { %v127_v50 = vpop.permute.xlu1 %126 }
  0x82   :  { %v142_v57 = vpop.permute.xlu0 %141 }
  0x83   :  { %v132_v55 = vpop.permute.xlu1 %131 }
  0x86   :  { %v117_v62 = vpop.permute.xlu0 %116 }
  0x87   :  { %v122_v60 = vpop.permute.xlu1 %121 }
  0x8a   :  { %v107_v4 = vpop.permute.xlu0 %106 }
  0x8b   :  { %v112_v1 = vpop.permute.xlu1 %111 }
  0x91   :  { %v97_v18 = vpop.permute.xlu0 %96 }
  0x92   :  { %v102_v13 = vpop.permute.xlu1 %101 }
  0x95   :  { %v87_v28 = vpop.permute.xlu0 %86 }
  0x96   :  { %v92_v24 = vpop.permute.xlu1 %91 }
  0x99   :  { %v77_v37 = vpop.permute.xlu0 %76 }
  0x9a   :  { %v82_v34 = vpop.permute.xlu1 %81 }
  0x9e   :  { %v72_v43 = vpop.permute.xlu1 %71 }
  0xcc   :  { %v895_v46 = vpop.f32.mrf.mxu0 }
  0xcd   :  { %v255_v41 = vadd.f32 %v895_v46, %v77_v37  ;;  %v685_v46 = vld [vmem:[%s930_s3 + $0x8] sm:$0xff]  }
  0xce   :  { %v897_v47 = vpop.f32.mrf.mxu0 }
  0xd0   :  { %v634_v48 = vpop.f32.mrf.mxu0 }
  0xd1   :  { %v258_v38 = vadd.f32 %v634_v48, %v82_v34 }
  0xd2   :  { %v899_v49 = vpop.f32.mrf.mxu0 }
  0xd3   :  { %v312_v44 = vmax.f32 %v258_v38, 0.0  ;;  %v250_v45 = vadd.f32 %v899_v49, %v72_v43  ;;  %v686_v49 = vld [vmem:[%s930_s3 + $0x10] sm:$0xff]  }
  0xd4   :  { %v637_v51 = vpop.f32.mrf.mxu0 }
  0xd5   :  { %v271_v29 = vadd.f32 %v637_v51, %v97_v18  ;;  %v67_v51 = vpop.permute.xlu0 %66  ;;  %v310_v48 = vmax.f32 %v250_v45, 0.0 }
  0xd6   :  { %v262_v53 = vpop.f32.mrf.mxu0 }
  0xd7   :  { %v315_v35 = vmax.f32 %v271_v29, 0.0  ;;  %v263_v36 = vadd.f32 %v262_v53, %v87_v28  ;;  %v247_v53 = vadd.f32 %v897_v47, %v67_v51  ;;  %v687_v47 = vld [vmem:[%s930_s3 + $0x18] sm:$0xff]  }
  0xd8   :  { %v638_v54 = vpop.f32.mrf.mxu0 }
  0xd9   :  { %v274_v25 = vadd.f32 %v638_v54, %v102_v13  ;;  %v313_v42 = vmax.f32 %v263_v36, 0.0 }
  0xda   :  { %v265_v56 = vpop.f32.mrf.mxu0 }
  0xdb   :  { %v316_v31 = vmax.f32 %v274_v25, 0.0  ;;  %v266_v32 = vadd.f32 %v265_v56, %v92_v24 }
  0xdc   :  { %v641_v58 = vpop.f32.mrf.mxu0 }
  0xdd   :  { %v287_v14 = vadd.f32 %v641_v58, %v117_v62  ;;  %v336_v39 = vpack.c.bf16 %v316_v31, %v315_v35  ;;  %v314_v40 = vmax.f32 %v266_v32, 0.0  ;;  %v357_v58 = vpop.permute.xlu1 %356 }
  0xde   :  { %v278_v59 = vpop.f32.mrf.mxu0 }
  0xdf   :  { %v319_v22 = vmax.f32 %v287_v14, 0.0  ;;  %v279_v23 = vadd.f32 %v278_v59, %v107_v4 }
  0xe0   :  { %v642_v61 = vpop.f32.mrf.mxu0 }
  0xe1   :  { %v290_v9 = vadd.f32 %v642_v61, %v122_v60  ;;  %v317_v30 = vmax.f32 %v279_v23, 0.0  ;;  %v367_v60 = vpop.permute.xlu1 %366 }
  0xe2   :  { %v281_v63 = vpop.f32.mrf.mxu0 }
  0xe3   :  { %v320_v19 = vmax.f32 %v290_v9, 0.0  ;;  %v282_v20 = vadd.f32 %v281_v63, %v112_v1 }
  0xe4   :  { %v645_v0 = vpop.f32.mrf.mxu0 }
  0xe5   :  { %v303_v3 = vadd.f32 %v645_v0, %v137_v52  ;;  %v338_v26 = vpack.c.bf16 %v320_v19, %v319_v22  ;;  %v318_v27 = vmax.f32 %v282_v20, 0.0  ;;  %v311_v52 = vmax.f32 %v255_v41, 0.0  ;;  %v502_v62 = vpop.permute.xlu1 %501 }
  0xe6   :  { %v294_v2 = vpop.f32.mrf.mxu0 }
  0xe7   :  { %v295_v6 = vadd.f32 %v294_v2, %v127_v50  ;;  %v323_v10 = vmax.f32 %v303_v3, 0.0  ;;  %v337_v33 = vpack.c.bf16 %v318_v27, %v317_v30  ;;  %v335_v50 = vpack.c.bf16 %v314_v40, %v313_v42 }
  0xe8   :  { %v646_v5 = vpop.f32.mrf.mxu0  ;;  %v334_v54 = vpack.c.bf16 %v312_v44, %v311_v52 }
  0xe9   :  { %v306_v7 = vadd.f32 %v646_v5, %v142_v57  ;;  %v321_v15 = vmax.f32 %v295_v6, 0.0  ;;  %v352_v57 = vpop.permute.xlu0 %351  ;;  %v507_v0 = vpop.permute.xlu1 %506 }
  0xea   :  { %v297_v8 = vpop.f32.mrf.mxu0 }
  0xeb   :  { %v324_v11 = vmax.f32 %v306_v7, 0.0  ;;  %v298_v12 = vadd.f32 %v297_v8, %v132_v55  ;;  %v309_v55 = vmax.f32 %v247_v53, 0.0 }
  0xed   :  { %v322_v16 = vmax.f32 %v298_v12, 0.0  ;;  %v340_v17 = vpack.c.bf16 %v324_v11, %v323_v10  ;;  %v333_v56 = vpack.c.bf16 %v310_v48, %v309_v55  ;;  %v362_v59 = vpop.permute.xlu0 %361  ;;  %v512_v3 = vpop.permute.xlu1 %511 }
  0xef   :  { %v339_v21 = vpack.c.bf16 %v322_v16, %v321_v15  ;;  %647 = vmatprep.subr.bf16.mxu1 %v340_v17 }
  0xf0   :  { %648 = vmatpush3.bf16.msra.mxu1 %v340_v17 }
  0xf1   :  { %649 = vmatprep.subr.bf16.mxu1 %v339_v21  ;;  %v497_v61 = vpop.permute.xlu0 %496  ;;  %v517_v14 = vpop.permute.xlu1 %516 }
  0xf4   :  { %650 = vmatpush3.bf16.msra.mxu1 %v339_v21 }
  0xf5   :  { %651 = vmatprep.subr.bf16.mxu1 %v338_v26  ;;  %v372_v63 = vpop.permute.xlu0 %371  ;;  %v522_v31 = vpop.permute.xlu1 %521 }
  0xf8   :  { %652 = vmatpush3.bf16.msra.mxu1 %v338_v26 }
  0xf9   :  { %653 = vmatprep.subr.bf16.mxu1 %v337_v33  ;;  %v377_v1 = vpop.permute.xlu0 %376  ;;  %v532_v51 = vpop.permute.xlu1 %531 }
  0xfc   :  { %654 = vmatpush3.bf16.msra.mxu1 %v337_v33 }
  0xfd   :  { %655 = vmatprep.subr.bf16.mxu1 %v336_v39  ;;  %v382_v10 = vpop.permute.xlu0 %381 }
 0x100   :  { %656 = vmatpush3.bf16.msra.mxu1 %v336_v39 }
 0x101   :  { %657 = vmatprep.subr.bf16.mxu1 %v335_v50  ;;  %v387_v24 = vpop.permute.xlu0 %386 }
 0x104   :  { %658 = vmatpush3.bf16.msra.mxu1 %v335_v50 }
 0x105   :  { %659 = vmatprep.subr.bf16.mxu1 %v334_v54  ;;  %v527_v42 = vpop.permute.xlu0 %526 }
 0x108   :  { %660 = vmatpush3.bf16.msra.mxu1 %v334_v54 }
 0x109   :  { %661 = vmatprep.subr.bf16.mxu1 %v333_v56 }
 0x10c   :  { %662 = vmatpush3.bf16.msra.mxu1 %v333_v56 }
 0x10f   :  { %664 = vmatmul.mubr.bf16.vlgmr.msra.gmra.mxu1 %v685_v46 }
 0x110   :  { %667 = vmatprep.mubr.bf16.mxu1 %v686_v49 }
 0x117   :  { %668 = vmatmul.mubr.bf16.gmra.mxu1 %v687_v47 }
 0x1cf   :  { %v665_v2 = vpop.f32.mrf.mxu1 }
 0x1d0   :  { %v456_v5 = vadd.f32 %v665_v2, %v362_v59 }
 0x1d1   :  { %v447_v4 = vpop.f32.mrf.mxu1 }
 0x1d2   :  { %v448_v6 = vadd.f32 %v447_v4, %v352_v57  ;;  %v480_v12 = vmax.f32 %v456_v5, 0.0 }
 0x1d3   :  { %v666_v7 = vpop.f32.mrf.mxu1 }
 0x1d4   :  { %v478_v8 = vmax.f32 %v448_v6, 0.0  ;;  %v459_v9 = vadd.f32 %v666_v7, %v367_v60  ;;  %v536_v20 = vmul.f32 %v507_v0, %v480_v12 }
 0x1d5   :  { %v450_v11 = vpop.f32.mrf.mxu1 }
 0x1d6   :  { %v451_v13 = vadd.f32 %v450_v11, %v357_v58  ;;  %v534_v15 = vmul.f32 %v497_v61, %v478_v8  ;;  %v481_v17 = vmax.f32 %v459_v9, 0.0  ;;  %v546_v34 = vsel %vm542_vm1, %v536_v20, 0.0 }
 0x1d7   :  { %v669_v16 = vpop.f32.mrf.mxu1  ;;  %v565_v61 = vstv %s933_s6 }
 0x1d8   :  { %v479_v18 = vmax.f32 %v451_v13, 0.0  ;;  %v472_v22 = vadd.f32 %v669_v16, %v382_v10  ;;  %v543_v25 = vsel %vm542_vm1, %v534_v15, 0.0  ;;  %v537_v27 = vmul.f32 %v512_v3, %v481_v17 }
 0x1d9   :  { %v463_v19 = vpop.f32.mrf.mxu1 }
 0x1da   :  { %v535_v21 = vmul.f32 %v502_v62, %v479_v18  ;;  %v464_v23 = vadd.f32 %v463_v19, %v372_v63  ;;  %v484_v35 = vmax.f32 %v472_v22, 0.0  ;;  %v548_v39 = vsel %vm542_vm1, %v537_v27, 0.0 }
 0x1db   :  { %v670_v26 = vpop.f32.mrf.mxu1 }
 0x1dc   :  { %v544_v28 = vsel %vm542_vm1, %v535_v21, 0.0  ;;  %v482_v29 = vmax.f32 %v464_v23, 0.0  ;;  %v475_v30 = vadd.f32 %v670_v26, %v387_v24  ;;  %v540_v44 = vmul.f32 %v527_v42, %v484_v35 }
 0x1dd   :  { %v545_v32 = vadd.f32 %v544_v28, %v543_v25  ;;  %v466_v33 = vpop.f32.mrf.mxu1 }
 0x1de   :  { %v538_v36 = vmul.f32 %v517_v14, %v482_v29  ;;  %v467_v37 = vadd.f32 %v466_v33, %v377_v1  ;;  %v485_v40 = vmax.f32 %v475_v30, 0.0  ;;  %v554_v55 = vsel %vm542_vm1, %v540_v44, 0.0 }
 0x1df   :  { %v547_v38 = vadd.f32 %v546_v34, %v545_v32 }
 0x1e0   :  { %v483_v41 = vmax.f32 %v467_v37, 0.0  ;;  %v550_v45 = vsel %vm542_vm1, %v538_v36, 0.0  ;;  %v541_v53 = vmul.f32 %v532_v51, %v485_v40 }
 0x1e1   :  { %v549_v43 = vadd.f32 %v548_v39, %v547_v38 }
 0x1e2   :  { %v539_v50 = vmul.f32 %v522_v31, %v483_v41  ;;  %v556_v46 = vsel %vm542_vm1, %v541_v53, 0.0 }
 0x1e3   :  { %v551_v52 = vadd.f32 %v550_v45, %v549_v43 }
 0x1e4   :  { %v552_v54 = vsel %vm542_vm1, %v539_v50, 0.0 }
 0x1e5   :  { %v553_v48 = vadd.f32 %v552_v54, %v551_v52 }
 0x1e7   :  { %v555_v56 = vadd.f32 %v554_v55, %v553_v48 }
 0x1e9   :  { %v557_v49 = vadd.f32 %v556_v46, %v555_v56 }
 0x1eb   :  { %v558_v47 = vrot.slane %v557_v49, 4 }
 0x1ed   :  { %v559_v57 = vadd.f32 %v558_v47, %v557_v49 }
 0x1ef   :  { %v560_v58 = vrot.slane %v559_v57, 2 }
 0x1f1   :  { %v561_v59 = vadd.f32 %v560_v58, %v559_v57 }
 0x1f3   :  { %v562_v60 = vrot.slane %v561_v59, 1 }
 0x1f5   :  { %v563_v62 = vadd.f32 %v562_v60, %v561_v59 }
 0x1f7   :  { %v566_v63 = vadd.f32 %v565_v61, %v563_v62 }
 0x1f9   :  { %v567_v0 = vsub.f32 0.0, %v566_v63 }
 0x1fb   :  { %v568_v1 = vmul.f32 1.442695, %v567_v0 }
 0x1fd   :  { %688 = vpow2.f32 %v568_v1 }
 0x20a   :  { %v689_v2 = vpop.eup %688 }
 0x20b   :  { %v570_v3 = vadd.f32 1.0, %v689_v2 }
 0x20d   :  { %690 = vrcp.f32 %v570_v3 }
 0x21a   :  { %v691_v4 = vpop.eup %690 }
 0x21b   :  { %573 = vst.msk [vmem:[#allocation3] sm:$0x1] %vm572_vm2, %v691_v4 }
 0x21c   :  { %703 = shalt.err (!%p700_p4)
}
 0x21d   :  { %583 = dma.vmem_to_hbm [thread:$0]  %s581_s16, 16, %s934_s7, [#allocation4]  }
 0x21e   :  { %712 = dma.done.wait [#allocation4], 16  }
 0x21f   :  { %713 = vsyncadd [#allocation4], 4294967280 }
 0x220   :  { %587 = vsyncpa [#allocation4], 1 }

</bundles_post_ra>
